<compile_context>
chip_gen: v7x
topology: tpu7x:2x2x1
jax: 0.10.0
libtpu: 0.0.40
codegen_flags: <defaults>
</compile_context>

<pallas_src>
import jax
import jax.numpy as jnp
from jax.experimental import pallas as pl
from jax.experimental.pallas import tpu as pltpu

LATENT_DIM = 64
HIDDEN1 = 64
HIDDEN2 = 128
OUTPUT_DIM = 4      # iris feature dimension


def _leaky_relu(x, slope=0.2):
    # Equivalent to where(x>0, x, slope*x) for slope in (0, 1); 2 VALU ops.
    return jnp.maximum(x, slope * x)


def _round_up(x, m):
    return ((x + m - 1) // m) * m


def generator_kernel(z_ref, w1_ref, b1_ref, w2_ref, b2_ref, w3_ref, b3_ref,
                     o_ref):
    """Fused 3-layer MLP on one batch tile.

    MXU matmuls take bf16 operands with f32 accumulation; bias-add and
    LeakyReLU run on the VPU in f32 (no bf16 VALU dependence -> v5e-safe).
    """
    z = z_ref[...]                                             # bf16 (TB, 64)

    h1 = jnp.dot(z, w1_ref[...], preferred_element_type=jnp.float32)
    h1 = _leaky_relu(h1 + b1_ref[...])                         # f32

    h2 = jnp.dot(h1.astype(jnp.bfloat16), w2_ref[...],
                 preferred_element_type=jnp.float32)
    h2 = _leaky_relu(h2 + b2_ref[...])                         # f32

    out = jnp.dot(h2.astype(jnp.bfloat16), w3_ref[...],
                  preferred_element_type=jnp.float32)
    o_ref[...] = (out + b3_ref[...]).astype(o_ref.dtype)


def _choose_tile(batch, tile_b):
    """Pick batch tile TB (multiple of 8, ideally 256) and padded batch Bp.

    Ensures >=2 grid steps once the batch has >=16 rows so v7x's second
    TensorCore gets work under dimension_semantics=("parallel",).
    """
    bp8 = _round_up(max(batch, 8), 8)
    tb = _round_up(min(tile_b, bp8), 8)
    if bp8 >= 16:
        tb = min(tb, _round_up(bp8 // 2, 8))       # >= 2 grid steps
    tb = max(tb, 8)
    if tb >= 256:
        tb256 = (tb // 256) * 256                  # clean MXU cadence on v6e/v7x
        if _round_up(bp8, tb256) <= _round_up(bp8, tb):
            tb = tb256
    bp = _round_up(bp8, tb)                        # TB divides Bp
    return tb, bp


def prepare_params(params):
    """One-time conversion: bf16 MXU weights, f32 biases (hoisted out of the
    per-call path)."""
    bf = jnp.bfloat16
    return {
        "w1": params["w1"].astype(bf), "b1": params["b1"].astype(jnp.float32),
        "w2": params["w2"].astype(bf), "b2": params["b2"].astype(jnp.float32),
        "w3": params["w3"].astype(bf), "b3": params["b3"].astype(jnp.float32),
    }


def generator_forward(z, prepared, tile_b=2048):
    """Run the Generator forward pass with a batch-tiled Pallas kernel.

    z: (B, LATENT_DIM) float32 (cast to bf16 for the MXU / input DMA)
    prepared: output of prepare_params (bf16 weights (in,out), f32 biases (1,out))
    Returns (B, OUTPUT_DIM) float32.
    """
    B = z.shape[0]
    w1, b1 = prepared["w1"], prepared["b1"]
    w2, b2 = prepared["w2"], prepared["b2"]
    w3, b3 = prepared["w3"], prepared["b3"]
    out_dim = w3.shape[1]

    TB, Bp = _choose_tile(B, tile_b)
    if Bp != B:
        z = jnp.pad(z, ((0, Bp - B), (0, 0)))
    z = z.astype(jnp.bfloat16)                     # halves the input DMA
    grid = (Bp // TB,)

    # Resident (non-tiled) operands: constant block index across the grid.
    resident = lambda a: pl.BlockSpec(a.shape, lambda i: (0, 0))

    weight_bytes = sum(a.size * a.dtype.itemsize
                       for a in (w1, b1, w2, b2, w3, b3))
    cost = pl.CostEstimate(
        flops=2 * Bp * (LATENT_DIM * HIDDEN1
                        + HIDDEN1 * HIDDEN2
                        + HIDDEN2 * out_dim),
        transcendentals=0,
        bytes_accessed=2 * Bp * LATENT_DIM + 4 * Bp * out_dim + weight_bytes,
    )

    # Rough double-buffered VMEM footprint; only override the scoped limit
    # when a very large tile_b would brush v5e's 16 MiB default.
    vmem_est = (2 * TB * LATENT_DIM * 2            # z, bf16, double-buffered
                + 2 * TB * out_dim * 4             # out, f32, double-buffered
                + weight_bytes
                + TB * (HIDDEN1 + 2 * HIDDEN2) * 4)  # f32 intermediates
    vmem_limit = None
    if vmem_est > 12 * 1024 * 1024:
        vmem_limit = min(2 * vmem_est, 100 * 1024 * 1024)

    out = pl.pallas_call(
        generator_kernel,
        out_shape=jax.ShapeDtypeStruct((Bp, out_dim), jnp.float32),
        grid=grid,
        in_specs=[
            pl.BlockSpec((TB, LATENT_DIM), lambda i: (i, 0)),  # z: batch-tiled
            resident(w1), resident(b1),
            resident(w2), resident(b2),
            resident(w3), resident(b3),
        ],
        out_specs=pl.BlockSpec((TB, out_dim), lambda i: (i, 0)),
        compiler_params=pltpu.CompilerParams(
            dimension_semantics=("parallel",),
            vmem_limit_bytes=vmem_limit),
        cost_estimate=cost,
    )(z, w1, b1, w2, b2, w3, b3)

    return out[:B] if Bp != B else out


def init_params(key):
    """Deterministic synthetic init (PyTorch-Linear-like fan_in uniform).
    Weights stored as (in_features, out_features), float32."""
    ks = jax.random.split(key, 6)

    def lin(kw, kb, fan_in, fan_out):
        bound = 1.0 / jnp.sqrt(jnp.float32(fan_in))
        w = jax.random.uniform(kw, (fan_in, fan_out), jnp.float32,
                               minval=-bound, maxval=bound)
        b = jax.random.uniform(kb, (1, fan_out), jnp.float32,
                               minval=-bound, maxval=bound)
        return w, b

    w1, b1 = lin(ks[0], ks[1], LATENT_DIM, HIDDEN1)
    w2, b2 = lin(ks[2], ks[3], HIDDEN1, HIDDEN2)
    w3, b3 = lin(ks[4], ks[5], HIDDEN2, OUTPUT_DIM)
    return {"w1": w1, "b1": b1, "w2": w2, "b2": b2, "w3": w3, "b3": b3}


def reference_forward_bf16(z, params):
    """Pure-JAX reference mimicking the kernel's bf16-operand / f32-accum math."""
    bf = jnp.bfloat16
    h1 = _leaky_relu(jnp.dot(z.astype(bf), params["w1"].astype(bf),
                             preferred_element_type=jnp.float32) + params["b1"])
    h2 = _leaky_relu(jnp.dot(h1.astype(bf), params["w2"].astype(bf),
                             preferred_element_type=jnp.float32) + params["b2"])
    return jnp.dot(h2.astype(bf), params["w3"].astype(bf),
                   preferred_element_type=jnp.float32) + params["b3"]


def reference_forward_f32(z, params):
    """Full-precision reference (module semantics)."""
    h1 = _leaky_relu(z @ params["w1"] + params["b1"])
    h2 = _leaky_relu(h1 @ params["w2"] + params["b2"])
    return h2 @ params["w3"] + params["b3"]


if __name__ == "__main__":
    key = jax.random.PRNGKey(0)
    k_param, k_z1, k_z2 = jax.random.split(key, 3)

    params = init_params(k_param)
    prepared = prepare_params(params)   # one-time bf16 cast, hoisted out of fwd

    # Small batch (single tile).
    batch = 8
    z = jax.random.normal(k_z1, (batch, LATENT_DIM), jnp.float32)
    out = jax.block_until_ready(generator_forward(z, prepared))
    assert out.shape == (batch, OUTPUT_DIM)
    ref_bf = reference_forward_bf16(z, params)
    ref_f32 = reference_forward_f32(z, params)
    assert jnp.allclose(out, ref_bf, atol=2e-3, rtol=2e-2), "mismatch vs bf16 ref"
    assert jnp.allclose(out, ref_f32, atol=5e-2, rtol=5e-2), "mismatch vs f32 ref"

    # Ragged batch with a forced small tile: exercises the multi-tile grid
    # (>=2 steps) and the batch-padding + row-slicing path.
    batch2 = 20
    z2 = jax.random.normal(k_z2, (batch2, LATENT_DIM), jnp.float32)
    out2 = jax.block_until_ready(generator_forward(z2, prepared, tile_b=8))
    assert out2.shape == (batch2, OUTPUT_DIM)
    ref2_bf = reference_forward_bf16(z2, params)
    ref2_f32 = reference_forward_f32(z2, params)
    assert jnp.allclose(out2, ref2_bf, atol=2e-3, rtol=2e-2), "mismatch (tiled)"
    assert jnp.allclose(out2, ref2_f32, atol=5e-2, rtol=5e-2), "mismatch (tiled, f32)"

    print("KERNEL_OK")
</pallas_src>

<mosaic_0001>
module attributes {stable_mosaic.version = 11 : i64} {
  func.func @generator_kernel(%arg0: i32, %arg1: memref<8x64xbf16, #tpu.memory_space<vmem>>, %arg2: memref<64x64xbf16, #tpu.memory_space<vmem>>, %arg3: memref<1x64xf32, #tpu.memory_space<vmem>>, %arg4: memref<64x128xbf16, #tpu.memory_space<vmem>>, %arg5: memref<1x128xf32, #tpu.memory_space<vmem>>, %arg6: memref<128x4xbf16, #tpu.memory_space<vmem>>, %arg7: memref<1x4xf32, #tpu.memory_space<vmem>>, %arg8: memref<8x4xf32, #tpu.memory_space<vmem>>) attributes {dimension_semantics = [#tpu.dimension_semantics<parallel>], iteration_bounds = array<i64: 1>, scalar_prefetch = 0 : i64, scratch_operands = 0 : i64, tpu.core_type = #tpu.core_type<tc>, window_params = [{transform_indices = @transform_0, window_bounds = array<i64: 8, 64>}, {pipeline_mode = #tpu.pipeline_mode<synchronous>, transform_indices = @transform_1, window_bounds = array<i64: 64, 64>}, {pipeline_mode = #tpu.pipeline_mode<synchronous>, transform_indices = @transform_2, window_bounds = array<i64: 1, 64>}, {pipeline_mode = #tpu.pipeline_mode<synchronous>, transform_indices = @transform_3, window_bounds = array<i64: 64, 128>}, {pipeline_mode = #tpu.pipeline_mode<synchronous>, transform_indices = @transform_4, window_bounds = array<i64: 1, 128>}, {pipeline_mode = #tpu.pipeline_mode<synchronous>, transform_indices = @transform_5, window_bounds = array<i64: 128, 4>}, {pipeline_mode = #tpu.pipeline_mode<synchronous>, transform_indices = @transform_6, window_bounds = array<i64: 1, 4>}, {transform_indices = @transform_7, window_bounds = array<i64: 8, 4>}]} {
    %c0 = arith.constant 0 : index
    %c0_0 = arith.constant 0 : index
    %0 = vector.load %arg1[%c0, %c0_0] : memref<8x64xbf16, #tpu.memory_space<vmem>>, vector<8x64xbf16>
    %c0_1 = arith.constant 0 : index
    %c0_2 = arith.constant 0 : index
    %1 = vector.load %arg2[%c0_1, %c0_2] : memref<64x64xbf16, #tpu.memory_space<vmem>>, vector<64x64xbf16>
    %cst = arith.constant dense<0.000000e+00> : vector<8x64xf32>
    %2 = tpu.matmul %0, %1, %cst {dimension_numbers = #tpu.dot_dimension_numbers<[1], [0], [0], [1], [0, 0, 1, 1], [], []>} : vector<8x64xbf16>, vector<64x64xbf16>, vector<8x64xf32> -> vector<8x64xf32>
    %c0_3 = arith.constant 0 : index
    %c0_4 = arith.constant 0 : index
    %3 = vector.load %arg3[%c0_3, %c0_4] : memref<1x64xf32, #tpu.memory_space<vmem>>, vector<1x64xf32>
    %4 = vector.broadcast %3 : vector<1x64xf32> to vector<8x64xf32>
    %5 = arith.addf %2, %4 : vector<8x64xf32>
    %cst_5 = arith.constant 2.000000e-01 : f32
    %6 = vector.broadcast %cst_5 : f32 to vector<8x64xf32>
    %7 = arith.mulf %6, %5 : vector<8x64xf32>
    %8 = arith.maximumf %5, %7 : vector<8x64xf32>
    %9 = arith.truncf %8 : vector<8x64xf32> to vector<8x64xbf16>
    %c0_6 = arith.constant 0 : index
    %c0_7 = arith.constant 0 : index
    %10 = vector.load %arg4[%c0_6, %c0_7] : memref<64x128xbf16, #tpu.memory_space<vmem>>, vector<64x128xbf16>
    %cst_8 = arith.constant dense<0.000000e+00> : vector<8x128xf32>
    %11 = tpu.matmul %9, %10, %cst_8 {dimension_numbers = #tpu.dot_dimension_numbers<[1], [0], [0], [1], [0, 0, 1, 1], [], []>} : vector<8x64xbf16>, vector<64x128xbf16>, vector<8x128xf32> -> vector<8x128xf32>
    %c0_9 = arith.constant 0 : index
    %c0_10 = arith.constant 0 : index
    %12 = vector.load %arg5[%c0_9, %c0_10] : memref<1x128xf32, #tpu.memory_space<vmem>>, vector<1x128xf32>
    %13 = vector.broadcast %12 : vector<1x128xf32> to vector<8x128xf32>
    %14 = arith.addf %11, %13 : vector<8x128xf32>
    %cst_11 = arith.constant 2.000000e-01 : f32
    %15 = vector.broadcast %cst_11 : f32 to vector<8x128xf32>
    %16 = arith.mulf %15, %14 : vector<8x128xf32>
    %17 = arith.maximumf %14, %16 : vector<8x128xf32>
    %18 = arith.truncf %17 : vector<8x128xf32> to vector<8x128xbf16>
    %c0_12 = arith.constant 0 : index
    %c0_13 = arith.constant 0 : index
    %19 = vector.load %arg6[%c0_12, %c0_13] : memref<128x4xbf16, #tpu.memory_space<vmem>>, vector<128x4xbf16>
    %cst_14 = arith.constant dense<0.000000e+00> : vector<8x4xf32>
    %20 = tpu.matmul %18, %19, %cst_14 {dimension_numbers = #tpu.dot_dimension_numbers<[1], [0], [0], [1], [0, 0, 1, 1], [], []>} : vector<8x128xbf16>, vector<128x4xbf16>, vector<8x4xf32> -> vector<8x4xf32>
    %c0_15 = arith.constant 0 : index
    %c0_16 = arith.constant 0 : index
    %21 = vector.load %arg7[%c0_15, %c0_16] : memref<1x4xf32, #tpu.memory_space<vmem>>, vector<1x4xf32>
    %22 = vector.broadcast %21 : vector<1x4xf32> to vector<8x4xf32>
    %23 = arith.addf %20, %22 : vector<8x4xf32>
    %c0_17 = arith.constant 0 : index
    %c0_18 = arith.constant 0 : index
    %24 = vector.load %arg8[%c0_17, %c0_18] : memref<8x4xf32, #tpu.memory_space<vmem>>, vector<8x4xf32>
    tpu.vector_store %arg8[%c0_17, %c0_18], %23 {strides = array<i32>} : memref<8x4xf32, #tpu.memory_space<vmem>>, vector<8x4xf32>,
    return
  }
  func.func @transform_0(%arg0: i32) -> (i32, i32) {
    %c0_i32 = arith.constant 0 : i32
    %c0_i32_0 = arith.constant 0 : i32
    return %arg0, %c0_i32 : i32, i32
  }
  func.func @transform_1(%arg0: i32) -> (i32, i32) {
    %c0_i32 = arith.constant 0 : i32
    %c0_i32_0 = arith.constant 0 : i32
    %c0_i32_1 = arith.constant 0 : i32
    return %c0_i32, %c0_i32_0 : i32, i32
  }
  func.func @transform_2(%arg0: i32) -> (i32, i32) {
    %c0_i32 = arith.constant 0 : i32
    %c0_i32_0 = arith.constant 0 : i32
    %c0_i32_1 = arith.constant 0 : i32
    return %c0_i32, %c0_i32_0 : i32, i32
  }
  func.func @transform_3(%arg0: i32) -> (i32, i32) {
    %c0_i32 = arith.constant 0 : i32
    %c0_i32_0 = arith.constant 0 : i32
    %c0_i32_1 = arith.constant 0 : i32
    return %c0_i32, %c0_i32_0 : i32, i32
  }
  func.func @transform_4(%arg0: i32) -> (i32, i32) {
    %c0_i32 = arith.constant 0 : i32
    %c0_i32_0 = arith.constant 0 : i32
    %c0_i32_1 = arith.constant 0 : i32
    return %c0_i32, %c0_i32_0 : i32, i32
  }
  func.func @transform_5(%arg0: i32) -> (i32, i32) {
    %c0_i32 = arith.constant 0 : i32
    %c0_i32_0 = arith.constant 0 : i32
    %c0_i32_1 = arith.constant 0 : i32
    return %c0_i32, %c0_i32_0 : i32, i32
  }
  func.func @transform_6(%arg0: i32) -> (i32, i32) {
    %c0_i32 = arith.constant 0 : i32
    %c0_i32_0 = arith.constant 0 : i32
    %c0_i32_1 = arith.constant 0 : i32
    return %c0_i32, %c0_i32_0 : i32, i32
  }
  func.func @transform_7(%arg0: i32) -> (i32, i32) {
    %c0_i32 = arith.constant 0 : i32
    %c0_i32_0 = arith.constant 0 : i32
    return %arg0, %c0_i32 : i32, i32
  }
}

</mosaic_0001>

<bundles_post_ra>
// kernel: tpu_custom_call.1
= control target key start
LH: loop header
LB: loop body
LE: loop exit
PB: predicated region body
PF: predicated region fallthrough
CT: control target
= control target key end

     0   :  { %12 = vsyncpa [#allocation3], 0  ;;  %s456_s24 = smov [#allocation2]   ;;  %s576_s0 = inlined_call_operand.hbm [shape: bf16[8,64], index: 0, kind: input, shape index: {}]   ;;  %s577_s1 = inlined_call_operand.vmem [shape: bf16[64,64], index: 1, kind: input, shape index: {}]   ;;  %s578_s2 = inlined_call_operand.vmem [shape: f32[1,64], index: 2, kind: input, shape index: {}]   ;;  %s579_s3 = inlined_call_operand.vmem [shape: bf16[64,128], index: 3, kind: input, shape index: {}]   ;;  %s580_s4 = inlined_call_operand.vmem [shape: f32[1,128], index: 4, kind: input, shape index: {}]   ;;  %s581_s5 = inlined_call_operand.vmem [shape: bf16[128,4], index: 5, kind: input, shape index: {}]   ;;  %s582_s6 = inlined_call_operand.vmem [shape: f32[1,4], index: 6, kind: input, shape index: {}]   ;;  %s583_s7 = inlined_call_operand.vmem [shape: f32[8,4], index: 7, kind: output, shape index: {}]  }
   0x1   :  { %s19_s25 = sshll.u32 %s456_s24, 4  ;;  %s432_s28 = scalar_lea.hbm %s576_s0, 64  ;;  %s20_s25 = int_to_ptr.vmem [resolvable:$true] %s19_s25 }
   0x2   :  { %p433_p0 = scmp.ne.s32.totalorder %s576_s0, %s432_s28  ;;  %p436_p1 = scmp.lt.u32.totalorder %s432_s28, %s576_s0 }
   0x4   :  { %p438_p2 = pnand %p436_p1, %p433_p0 }
   0x6   :  { %441 = shalt.err (!%p438_p2)
}
   0x7   :  { %s442_s10 = scalar_lea.vmem %s20_s25, 64  ;;  %p447_p4 = scmp.lt.s32.totalorder %s20_s25, %s20_s25 }
   0x8   :  { %p443_p3 = scmp.ne.s32.totalorder %s20_s25, %s442_s10  ;;  %p448_p5 = scmp.lt.s32.totalorder %s442_s10, %s442_s10 }
   0xa   :  { %p449_p6 = por %p448_p5, %p447_p4 }
   0xc   :  { %p450_p7 = pnand %p449_p6, %p443_p3 }
   0xe   :  { %453 = shalt.err (!%p450_p7)
}
   0xf   :  { %22 = dma.hbm_to_vmem [thread:$0]  %s576_s0, 64, %s20_s25, [#allocation3]  }
  0x10   :  { %454 = dma.done.wait [#allocation3], 64  }
  0x11   :  { %455 = vsyncadd [#allocation3], 4294967232  ;;  %v457_v0 = vmov 0.0   ;;  %vm458_vm0 = vmmov 0   ;;  %v416_v1 = vld [vmem:[%s577_s1] sm:$0xff]   ;;  %v417_v2 = vld [vmem:[%s577_s1 + $0x8] sm:$0xff]  }
  0x12   :  { %369 = vmatprep.subr.bf16.mxu1 %v457_v0  ;;  %377 = vmatprep.mubr.msk.bf16.mxu1 %vm458_vm0, %v457_v0  ;;  %v418_v3 = vld [vmem:[%s577_s1 + $0x10] sm:$0xff]   ;;  %v419_v4 = vld [vmem:[%s577_s1 + $0x18] sm:$0xff]   ;;  %v39_v5 = vld [vmem:[#allocation2] sm:$0xf]  ;;  %vm79_vm1 = vcmask 523264   ;;  %vm322_vm2 = vcmask 31744  }
  0x13   :  { %393 = vmatprep.subr.bf16.mxu0 %v457_v0  ;;  %409 = vmatprep.mubr.msk.bf16.mxu0 %vm458_vm0, %v457_v0  ;;  %v420_v6 = vld [vmem:[%s579_s3] sm:$0xff]   ;;  %v421_v7 = vld [vmem:[%s579_s3 + $0x8] sm:$0xff]   ;;  %v422_v8 = vld [vmem:[%s579_s3 + $0x10] sm:$0xff]  }
  0x14   :  { %370 = vmatpush3.bf16.msra.mxu1 %v416_v1  ;;  %v423_v9 = vld [vmem:[%s579_s3 + $0x18] sm:$0xff]   ;;  %v424_v10 = vld [vmem:[%s581_s5] sm:$0xff]   ;;  %v425_v11 = vld [vmem:[%s581_s5 + $0x8] sm:$0xff]  }
  0x15   :  { %371 = vmatprep.subr.bf16.mxu1 %v457_v0  ;;  %394 = vmatpush3.bf16.msra.mxu0 %v424_v10  ;;  %v426_v12 = vld [vmem:[%s581_s5 + $0x10] sm:$0xff]   ;;  %v427_v13 = vld [vmem:[%s581_s5 + $0x18] sm:$0xff]   ;;  %v428_v14 = vld [vmem:[%s581_s5 + $0x20] sm:$0xff]  }
  0x16   :  { %395 = vmatprep.subr.bf16.mxu0 %v457_v0  ;;  %v429_v15 = vld [vmem:[%s581_s5 + $0x28] sm:$0xff]   ;;  %v329_v16 = vld [vmem:[%s578_s2] ss:$0 sm:$0xff]  ;;  %v430_v25 = vld [vmem:[%s581_s5 + $0x30] sm:$0xff]  }
  0x17   :  { %v431_v26 = vld [vmem:[%s581_s5 + $0x38] sm:$0xff]   ;;  %v335_v27 = vld [vmem:[%s580_s4] ss:$0 sm:$0xff] }
  0x18   :  { %372 = vmatpush3.bf16.msra.mxu1 %v417_v2  ;;  %v341_v36 = vld [vmem:[%s582_s6] ss:$0 sm:$0xff] }
  0x19   :  { %373 = vmatprep.subr.bf16.mxu1 %v457_v0  ;;  %396 = vmatpush3.bf16.msra.mxu0 %v425_v11 }
  0x1a   :  { %397 = vmatprep.subr.bf16.mxu0 %v457_v0 }
  0x1c   :  { %374 = vmatpush3.bf16.msra.mxu1 %v418_v3 }
  0x1d   :  { %375 = vmatprep.subr.bf16.mxu1 %v457_v0  ;;  %398 = vmatpush3.bf16.msra.mxu0 %v426_v12 }
  0x1e   :  { %399 = vmatprep.subr.bf16.mxu0 %v457_v0 }
  0x20   :  { %376 = vmatpush3.bf16.msra.mxu1 %v419_v4 }
  0x21   :  { %381 = vmatprep.subr.bf16.mxu1 %v457_v0  ;;  %400 = vmatpush3.bf16.msra.mxu0 %v427_v13 }
  0x22   :  { %401 = vmatprep.subr.bf16.mxu0 %v457_v0 }
  0x23   :  { %378 = vmatmul.mubr.msk.bf16.vlgmr.msra.gmra.mrb[0].mxu1 %vm79_vm1, %v39_v5 }
  0x24   :  { %382 = vmatpush3.bf16.msra.mxu1 %v420_v6  ;;  %389 = vmatprep.mubr.msk.bf16.mxu1 %vm458_vm0, %v457_v0 }
  0x25   :  { %383 = vmatprep.subr.bf16.mxu1 %v457_v0  ;;  %402 = vmatpush3.bf16.msra.mxu0 %v428_v14 }
  0x26   :  { %403 = vmatprep.subr.bf16.mxu0 %v457_v0 }
  0x28   :  { %384 = vmatpush3.bf16.msra.mxu1 %v421_v7 }
  0x29   :  { %385 = vmatprep.subr.bf16.mxu1 %v457_v0  ;;  %404 = vmatpush3.bf16.msra.mxu0 %v429_v15 }
  0x2a   :  { %405 = vmatprep.subr.bf16.mxu0 %v457_v0 }
  0x2c   :  { %386 = vmatpush3.bf16.msra.mxu1 %v422_v8 }
  0x2d   :  { %387 = vmatprep.subr.bf16.mxu1 %v457_v0  ;;  %406 = vmatpush3.bf16.msra.mxu0 %v430_v25 }
  0x2e   :  { %407 = vmatprep.subr.bf16.mxu0 %v457_v0 }
  0x30   :  { %388 = vmatpush3.bf16.msra.mxu1 %v423_v9 }
  0x31   :  { %408 = vmatpush3.bf16.msra.mxu0 %v431_v26 }
  0xf6   :  { %v117_v17 = vpop.f32.mrb[0].mxu1 }
  0xf7   :  { %v118_v18 = vadd.f32 %v329_v16, %v117_v17  ;;  %v379_v19 = vpop.f32.mrb[1].mxu1 }
  0xf8   :  { %v120_v20 = vpop.f32.mrb[2].mxu1 }
  0xf9   :  { %v123_v21 = vmul.f32 0.2, %v118_v18  ;;  %v380_v22 = vpop.f32.mrb[3].mxu1 }
  0xfb   :  { %v124_v23 = vmax.f32 %v118_v18, %v123_v21 }
  0xfd   :  { %v125_v24 = vpack.c.bf16 %v124_v23, %v124_v23 }
  0xff   :  { %390 = vmatmul.mubr.msk.bf16.vlgmr.msra.gmra.mrb[4].mxu1 %vm79_vm1, %v125_v24 }
 0x1d2   :  { %v202_v28 = vpop.f32.mrb[4].mxu1 }
 0x1d3   :  { %v203_v29 = vadd.f32 %v335_v27, %v202_v28  ;;  %v391_v30 = vpop.f32.mrb[5].mxu1 }
 0x1d4   :  { %v205_v31 = vpop.f32.mrb[6].mxu1 }
 0x1d5   :  { %v208_v32 = vmul.f32 0.2, %v203_v29  ;;  %v392_v33 = vpop.f32.mrb[7].mxu1 }
 0x1d7   :  { %v209_v34 = vmax.f32 %v203_v29, %v208_v32 }
 0x1d9   :  { %v210_v35 = vpack.c.bf16 %v209_v34, %v209_v34 }
 0x1db   :  { %410 = vmatmul.mubr.bf16.vlgmr.msra.gmra.mrb[0].mxu0 %v210_v35 }
 0x2ae   :  { %v316_v37 = vpop.f32.mrb[0].mxu0 }
 0x2af   :  { %v317_v38 = vadd.f32 %v341_v36, %v316_v37  ;;  %v411_v39 = vpop.f32.mrb[1].mxu0 }
 0x2b0   :  { %v319_v40 = vpop.f32.mrb[2].mxu0 }
 0x2b1   :  { %323 = vst.msk [vmem:[%s583_s7] sm:$0xff] %vm322_vm2, %v317_v38  ;;  %v412_v41 = vpop.f32.mrb[3].mxu0 }
 0x2b2   :  { %328 = vsyncpa [#allocation3], 1 }

</bundles_post_ra>
